<compile_context>
chip_gen: v7x
topology: tpu7x:2x2x1
jax: 0.10.0
libtpu: 0.0.40
codegen_flags: <defaults>
</compile_context>

<pallas_src>
import functools

import jax
import jax.numpy as jnp
from jax.experimental import pallas as pl
from jax.experimental.pallas import tpu as pltpu

LANE = 128      # lane width: last dims padded to multiples of this
SUBLANE = 8     # sublane width: batch tile is a multiple of this


def _round_up(v: int, m: int) -> int:
    return (v + m - 1) // m * m


def _fused_mlp_kernel(*refs, num_layers: int, matmul_dtype):
    """refs = (x_ref, w0_ref, b0_ref, w1_ref, b1_ref, ..., o_ref).

    x_ref:   [TB, in_pad]      matmul_dtype
    w_ref_l: [d_in_l, d_out_l] matmul_dtype   (resident across the batch grid)
    b_ref_l: [1, d_out_l]      float32
    o_ref:   [TB, out_pad]     float32
    """
    x_ref = refs[0]
    o_ref = refs[-1]
    wb = refs[1:-1]

    h = x_ref[...]  # [TB, in_pad] in matmul_dtype
    for l in range(num_layers):
        w_ref = wb[2 * l]
        b_ref = wb[2 * l + 1]
        # MXU matmul with f32 accumulation.
        y = jnp.dot(h, w_ref[...], preferred_element_type=jnp.float32)
        # f32 epilogue: bias broadcast over batch (+ ReLU for hidden layers).
        y = y + b_ref[...]
        if l != num_layers - 1:
            # Dropout(0.5) in eval mode == identity, then ReLU.
            y = jnp.maximum(y, 0.0)
            h = y.astype(matmul_dtype)   # feed next MXU matmul in bf16
        else:
            o_ref[...] = y.astype(o_ref.dtype)


def init_simple_mlp_params(key, in_features, out_features,
                           hidden_layer_sizes=(100,)):
    """Deterministic PyTorch-style init: U(-1/sqrt(fan_in), 1/sqrt(fan_in)).

    Weights stored as [in, out] (transposed vs torch's [out, in]) so the kernel
    computes x @ W + b directly.
    """
    params = []
    fan_in = in_features
    sizes = list(hidden_layer_sizes) + [out_features]
    for size in sizes:
        key, kw, kb = jax.random.split(key, 3)
        bound = 1.0 / jnp.sqrt(jnp.float32(fan_in))
        w = jax.random.uniform(kw, (fan_in, size), jnp.float32, -bound, bound)
        b = jax.random.uniform(kb, (1, size), jnp.float32, -bound, bound)
        params.append((w, b))
        fan_in = size
    return params


def simple_mlp_forward(x, params, *, matmul_dtype=jnp.bfloat16,
                       out_dtype=jnp.float32):
    """Fused forward pass: (Linear -> Dropout[eval] -> ReLU) * H -> Linear."""
    n, in_f = x.shape
    num_layers = len(params)
    out_f = params[-1][0].shape[1]
    itemsize = jnp.dtype(matmul_dtype).itemsize

    # ---- zero-pad every feature dim to a multiple of 128 lanes. Padded weight
    #      rows/cols and bias lanes are zero, so padded lanes stay exactly zero
    #      through every Linear + ReLU and can be sliced off at the end.
    in_pad = _round_up(in_f, LANE)
    dims = [in_pad]
    padded = []
    for (w, b) in params:
        di, do = w.shape
        di_p, do_p = _round_up(di, LANE), _round_up(do, LANE)
        wp = jnp.zeros((di_p, do_p), matmul_dtype).at[:di, :do].set(
            w.astype(matmul_dtype))
        bp = jnp.zeros((1, do_p), jnp.float32).at[:, :do].set(
            b.astype(jnp.float32))
        padded.append((wp, bp))
        dims.append(do_p)
    out_pad = dims[-1]

    # ---- batch tile: largest multiple-of-8 tile whose (double-buffered) x/out
    #      tiles + resident padded weights fit a conservative VMEM budget
    #      (safe for v7x's 32 MiB scoped default; plenty of room on v5e/v6e).
    weight_bytes = sum(w.size * itemsize + b.size * 4 for w, b in padded)
    budget = 24 * 1024 * 1024
    tb = SUBLANE
    for cand in (512, 256, 128, 64, 32, 16, 8):
        tile_bytes = (2 * cand * in_pad * itemsize      # double-buffered x tiles
                      + 2 * cand * out_pad * 4          # double-buffered out tiles
                      + cand * max(dims) * 4)           # intermediate activation
        if weight_bytes + tile_bytes <= budget:
            tb = cand
            break

    # ---- zero-pad the batch so it divides into tiles of tb.
    n_pad = _round_up(max(n, 1), tb)
    x_p = jnp.zeros((n_pad, in_pad), matmul_dtype).at[:n, :in_f].set(
        x.astype(matmul_dtype))

    grid = (n_pad // tb,)
    in_specs = [pl.BlockSpec((tb, in_pad), lambda i: (i, 0))]
    args = [x_p]
    for (wp, bp) in padded:
        # Weights/biases stay resident in VMEM across the whole batch grid.
        in_specs.append(pl.BlockSpec(wp.shape, lambda i: (0, 0)))
        in_specs.append(pl.BlockSpec(bp.shape, lambda i: (0, 0)))
        args.extend([wp, bp])

    flops = 2 * n_pad * sum(int(w.shape[0]) * int(w.shape[1]) for w, _ in padded)
    bytes_accessed = (int(x_p.size) * itemsize + int(weight_bytes)
                      + n_pad * out_pad * jnp.dtype(out_dtype).itemsize)

    kernel = functools.partial(_fused_mlp_kernel,
                               num_layers=num_layers,
                               matmul_dtype=matmul_dtype)

    y_pad = pl.pallas_call(
        kernel,
        out_shape=jax.ShapeDtypeStruct((n_pad, out_pad), out_dtype),
        grid=grid,
        in_specs=in_specs,
        out_specs=pl.BlockSpec((tb, out_pad), lambda i: (i, 0)),
        compiler_params=pltpu.CompilerParams(
            dimension_semantics=("parallel",)),
        cost_estimate=pl.CostEstimate(flops=flops, transcendentals=0,
                                      bytes_accessed=bytes_accessed),
    )(*args)

    return y_pad[:n, :out_f]


def _reference_forward(x, params):
    """Plain-JAX eval-mode reference (dropout == identity)."""
    ref = x
    for i, (w, b) in enumerate(params):
        ref = ref @ w + b
        if i != len(params) - 1:
            ref = jnp.maximum(ref, 0.0)
    return ref


if __name__ == "__main__":
    # Small shapes consistent with the module: batch=8, in=32, hidden=(100,), out=4.
    batch, in_features, out_features = 8, 32, 4
    hidden_layer_sizes = (100,)

    key = jax.random.PRNGKey(0)
    key, kx = jax.random.split(key)
    x = jax.random.normal(kx, (batch, in_features), jnp.float32)

    params = init_simple_mlp_params(key, in_features, out_features,
                                    hidden_layer_sizes)

    y = simple_mlp_forward(x, params)
    jax.block_until_ready(y)
    assert y.shape == (batch, out_features)

    # Kernel uses bf16 MXU inputs with f32 accumulation -> compare against the
    # f32 reference with a tolerance that covers bf16 rounding.
    ref = _reference_forward(x, params)
    assert jnp.allclose(y, ref, atol=5e-2, rtol=5e-2)

    # Robustness check: non-tile-aligned, larger batch (exercises batch padding
    # and the batch grid / slicing path).
    key, kx2 = jax.random.split(key)
    x2 = jax.random.normal(kx2, (200, in_features), jnp.float32)
    y2 = simple_mlp_forward(x2, params)
    jax.block_until_ready(y2)
    assert y2.shape == (200, out_features)
    ref2 = _reference_forward(x2, params)
    assert jnp.allclose(y2, ref2, atol=5e-2, rtol=5e-2)

    print("KERNEL_OK")
</pallas_src>

<mosaic_0001>
module attributes {stable_mosaic.version = 11 : i64} {
  func.func @_fused_mlp_kernel(%arg0: i32, %arg1: memref<512x128xbf16, #tpu.memory_space<vmem>>, %arg2: memref<128x128xbf16, #tpu.memory_space<vmem>>, %arg3: memref<1x128xf32, #tpu.memory_space<vmem>>, %arg4: memref<128x128xbf16, #tpu.memory_space<vmem>>, %arg5: memref<1x128xf32, #tpu.memory_space<vmem>>, %arg6: memref<512x128xf32, #tpu.memory_space<vmem>>) attributes {dimension_semantics = [#tpu.dimension_semantics<parallel>], iteration_bounds = array<i64: 1>, scalar_prefetch = 0 : i64, scratch_operands = 0 : i64, tpu.core_type = #tpu.core_type<tc>, window_params = [{transform_indices = @transform_0, window_bounds = array<i64: 512, 128>}, {pipeline_mode = #tpu.pipeline_mode<synchronous>, transform_indices = @transform_1, window_bounds = array<i64: 128, 128>}, {pipeline_mode = #tpu.pipeline_mode<synchronous>, transform_indices = @transform_2, window_bounds = array<i64: 1, 128>}, {pipeline_mode = #tpu.pipeline_mode<synchronous>, transform_indices = @transform_3, window_bounds = array<i64: 128, 128>}, {pipeline_mode = #tpu.pipeline_mode<synchronous>, transform_indices = @transform_4, window_bounds = array<i64: 1, 128>}, {transform_indices = @transform_5, window_bounds = array<i64: 512, 128>}]} {
    %c0 = arith.constant 0 : index
    %c0_0 = arith.constant 0 : index
    %0 = vector.load %arg1[%c0, %c0_0] : memref<512x128xbf16, #tpu.memory_space<vmem>>, vector<512x128xbf16>
    %c0_1 = arith.constant 0 : index
    %c0_2 = arith.constant 0 : index
    %1 = vector.load %arg2[%c0_1, %c0_2] : memref<128x128xbf16, #tpu.memory_space<vmem>>, vector<128x128xbf16>
    %cst = arith.constant dense<0.000000e+00> : vector<512x128xf32>
    %2 = tpu.matmul %0, %1, %cst {dimension_numbers = #tpu.dot_dimension_numbers<[1], [0], [0], [1], [0, 0, 1, 1], [], []>} : vector<512x128xbf16>, vector<128x128xbf16>, vector<512x128xf32> -> vector<512x128xf32>
    %c0_3 = arith.constant 0 : index
    %c0_4 = arith.constant 0 : index
    %3 = vector.load %arg3[%c0_3, %c0_4] : memref<1x128xf32, #tpu.memory_space<vmem>>, vector<1x128xf32>
    %4 = vector.broadcast %3 : vector<1x128xf32> to vector<512x128xf32>
    %5 = arith.addf %2, %4 : vector<512x128xf32>
    %cst_5 = arith.constant 0.000000e+00 : f32
    %6 = vector.broadcast %cst_5 : f32 to vector<512x128xf32>
    %7 = arith.maximumf %5, %6 : vector<512x128xf32>
    %8 = arith.truncf %7 : vector<512x128xf32> to vector<512x128xbf16>
    %c0_6 = arith.constant 0 : index
    %c0_7 = arith.constant 0 : index
    %9 = vector.load %arg4[%c0_6, %c0_7] : memref<128x128xbf16, #tpu.memory_space<vmem>>, vector<128x128xbf16>
    %cst_8 = arith.constant dense<0.000000e+00> : vector<512x128xf32>
    %10 = tpu.matmul %8, %9, %cst_8 {dimension_numbers = #tpu.dot_dimension_numbers<[1], [0], [0], [1], [0, 0, 1, 1], [], []>} : vector<512x128xbf16>, vector<128x128xbf16>, vector<512x128xf32> -> vector<512x128xf32>
    %c0_9 = arith.constant 0 : index
    %c0_10 = arith.constant 0 : index
    %11 = vector.load %arg5[%c0_9, %c0_10] : memref<1x128xf32, #tpu.memory_space<vmem>>, vector<1x128xf32>
    %12 = vector.broadcast %11 : vector<1x128xf32> to vector<512x128xf32>
    %13 = arith.addf %10, %12 : vector<512x128xf32>
    %c0_11 = arith.constant 0 : index
    %c0_12 = arith.constant 0 : index
    %14 = vector.load %arg6[%c0_11, %c0_12] : memref<512x128xf32, #tpu.memory_space<vmem>>, vector<512x128xf32>
    tpu.vector_store %arg6[%c0_11, %c0_12], %13 {strides = array<i32>} : memref<512x128xf32, #tpu.memory_space<vmem>>, vector<512x128xf32>,
    return
  }
  func.func @transform_0(%arg0: i32) -> (i32, i32) {
    %c0_i32 = arith.constant 0 : i32
    %c0_i32_0 = arith.constant 0 : i32
    return %arg0, %c0_i32 : i32, i32
  }
  func.func @transform_1(%arg0: i32) -> (i32, i32) {
    %c0_i32 = arith.constant 0 : i32
    %c0_i32_0 = arith.constant 0 : i32
    %c0_i32_1 = arith.constant 0 : i32
    return %c0_i32, %c0_i32_0 : i32, i32
  }
  func.func @transform_2(%arg0: i32) -> (i32, i32) {
    %c0_i32 = arith.constant 0 : i32
    %c0_i32_0 = arith.constant 0 : i32
    %c0_i32_1 = arith.constant 0 : i32
    return %c0_i32, %c0_i32_0 : i32, i32
  }
  func.func @transform_3(%arg0: i32) -> (i32, i32) {
    %c0_i32 = arith.constant 0 : i32
    %c0_i32_0 = arith.constant 0 : i32
    %c0_i32_1 = arith.constant 0 : i32
    return %c0_i32, %c0_i32_0 : i32, i32
  }
  func.func @transform_4(%arg0: i32) -> (i32, i32) {
    %c0_i32 = arith.constant 0 : i32
    %c0_i32_0 = arith.constant 0 : i32
    %c0_i32_1 = arith.constant 0 : i32
    return %c0_i32, %c0_i32_0 : i32, i32
  }
  func.func @transform_5(%arg0: i32) -> (i32, i32) {
    %c0_i32 = arith.constant 0 : i32
    %c0_i32_0 = arith.constant 0 : i32
    return %arg0, %c0_i32 : i32, i32
  }
}

</mosaic_0001>

<bundles_post_ra>
// kernel: tpu_custom_call.1
= control target key start
LH: loop header
LB: loop body
LE: loop exit
PB: predicated region body
PF: predicated region fallthrough
CT: control target
= control target key end

     0   :  { %10 = vsyncpa [#allocation3], 0  ;;  %s1897_s0 = inlined_call_operand.hbm [shape: bf16[512,128], index: 0, kind: input, shape index: {}]   ;;  %s1898_s1 = inlined_call_operand.hbm [shape: bf16[128,128], index: 1, kind: input, shape index: {}]   ;;  %s1899_s2 = inlined_call_operand.vmem [shape: f32[1,128], index: 2, kind: input, shape index: {}]   ;;  %s1900_s3 = inlined_call_operand.hbm [shape: bf16[128,128], index: 3, kind: input, shape index: {}]   ;;  %s1901_s4 = inlined_call_operand.vmem [shape: f32[1,128], index: 4, kind: input, shape index: {}]   ;;  %s1902_s5 = inlined_call_operand.hbm [shape: f32[512,128], index: 5, kind: output, shape index: {}]  }
   0x1   :  { %11 = vsyncpa [#allocation6], 0 }
   0x2   :  { %12 = vsyncpa [#allocation4], 0  ;;  %s1657_s18 = smov [#allocation5]   ;;  %s1658_s20 = smov [#allocation2]  }
   0x3   :  { %s30_s19 = sshll.u32 %s1657_s18, 4  ;;  %s18_s21 = sshll.u32 %s1658_s20, 4  ;;  %s31_s19 = int_to_ptr.vmem [resolvable:$true] %s30_s19  ;;  %s1695_s21 = int_to_ptr.vmem [resolvable:$true] %s18_s21 }
   0x4   :  { %s1563_s24 = scalar_lea.hbm %s1898_s1, 1024 }
   0x5   :  { %p1564_p0 = scmp.ne.s32.totalorder %s1898_s1, %s1563_s24  ;;  %p1567_p1 = scmp.lt.u32.totalorder %s1563_s24, %s1898_s1 }
   0x7   :  { %p1569_p2 = pnand %p1567_p1, %p1564_p0 }
   0x9   :  { %1572 = shalt.err (!%p1569_p2)
}
   0xa   :  { %s1573_s29 = scalar_lea.vmem %s31_s19, 1024  ;;  %p1578_p4 = scmp.lt.s32.totalorder %s31_s19, %s31_s19 }
   0xb   :  { %p1574_p3 = scmp.ne.s32.totalorder %s31_s19, %s1573_s29  ;;  %p1579_p5 = scmp.lt.s32.totalorder %s1573_s29, %s1573_s29 }
   0xd   :  { %p1580_p6 = por %p1579_p5, %p1578_p4 }
   0xf   :  { %p1581_p7 = pnand %p1580_p6, %p1574_p3 }
  0x11   :  { %1584 = shalt.err (!%p1581_p7)
}
  0x12   :  { %s1659_s30 = smov 64   ;;  %s1660_s6 = smov 4  }
  0x13   :  { %36 = dma.hbm_to_vmem [thread:$0]  %s1898_s1, 1024, %s31_s19, [#allocation6], %s1659_s30, %s1659_s30, %s1660_s6  }
  0x14   :  { %s1585_s11 = scalar_lea.hbm %s1897_s0, 4096 }
  0x15   :  { %p1586_p8 = scmp.ne.s32.totalorder %s1897_s0, %s1585_s11  ;;  %p1589_p9 = scmp.lt.u32.totalorder %s1585_s11, %s1897_s0 }
  0x17   :  { %p1591_p10 = pnand %p1589_p9, %p1586_p8 }
  0x19   :  { %1594 = shalt.err (!%p1591_p10)
}
  0x1a   :  { %s1595_s16 = scalar_lea.vmem %s1695_s21, 4096  ;;  %p1600_p12 = scmp.lt.s32.totalorder %s1695_s21, %s1695_s21 }
  0x1b   :  { %p1596_p11 = scmp.ne.s32.totalorder %s1695_s21, %s1595_s16  ;;  %p1601_p13 = scmp.lt.s32.totalorder %s1595_s16, %s1595_s16 }
  0x1d   :  { %p1602_p0 = por %p1601_p13, %p1600_p12 }
  0x1f   :  { %p1603_p1 = pnand %p1602_p0, %p1596_p11 }
  0x21   :  { %1606 = shalt.err (!%p1603_p1)
}
  0x22   :  { %24 = dma.hbm_to_vmem [thread:$0]  %s1897_s0, 4096, %s1695_s21, [#allocation3], %s1659_s30, %s1659_s30, %s1660_s6  }
  0x23   :  { %s1661_s18 = smov [#allocation7]   ;;  %s1607_s23 = scalar_lea.hbm %s1900_s3, 1024 }
  0x24   :  { %s44_s19 = sshll.u32 %s1661_s18, 4  ;;  %p1608_p2 = scmp.ne.s32.totalorder %s1900_s3, %s1607_s23  ;;  %s45_s19 = int_to_ptr.vmem [resolvable:$true] %s44_s19 }
  0x25   :  { %p1611_p3 = scmp.lt.u32.totalorder %s1607_s23, %s1900_s3 }
  0x27   :  { %p1613_p4 = pnand %p1611_p3, %p1608_p2 }
  0x29   :  { %1616 = shalt.err (!%p1613_p4)
}
  0x2a   :  { %s1617_s28 = scalar_lea.vmem %s45_s19, 1024  ;;  %p1622_p6 = scmp.lt.s32.totalorder %s45_s19, %s45_s19 }
  0x2b   :  { %p1618_p5 = scmp.ne.s32.totalorder %s45_s19, %s1617_s28  ;;  %p1623_p7 = scmp.lt.s32.totalorder %s1617_s28, %s1617_s28 }
  0x2d   :  { %p1624_p8 = por %p1623_p7, %p1622_p6 }
  0x2f   :  { %p1625_p9 = pnand %p1624_p8, %p1618_p5 }
  0x31   :  { %1628 = shalt.err (!%p1625_p9)
}
  0x32   :  { %50 = dma.hbm_to_vmem [thread:$0]  %s1900_s3, 1024, %s45_s19, [#allocation6], %s1659_s30, %s1659_s30, %s1660_s6  }
  0x33   :  { %1651 = dma.done.wait [#allocation3], 4096  }
  0x34   :  { %1652 = vsyncadd [#allocation3], 4294963200 }
  0x35   :  { %1653 = dma.done.wait [#allocation6], 2048  }
  0x36   :  { %1654 = vsyncadd [#allocation6], 4294965248  ;;  %v1515_v0 = vld [vmem:[#allocation5] sm:$0xff]   ;;  %v1516_v1 = vld [vmem:[#allocation5 + $0x8] sm:$0xff]  }
  0x37   :  { %1347 = vmatprep.subr.bf16.mxu0 %v1515_v0  ;;  %v1517_v2 = vld [vmem:[#allocation5 + $0x10] sm:$0xff]   ;;  %v1518_v3 = vld [vmem:[#allocation5 + $0x18] sm:$0xff]   ;;  %v1523_v4 = vld [vmem:[#allocation2] sm:$0xff]  }
  0x38   :  { %1348 = vmatpush3.bf16.msra.mxu0 %v1515_v0  ;;  %1363 = vmatprep.mubr.bf16.mxu0 %v1523_v4  ;;  %v1519_v5 = vld [vmem:[#allocation5 + $0x20] sm:$0xff]   ;;  %v1520_v6 = vld [vmem:[#allocation5 + $0x28] sm:$0xff]   ;;  %v1521_v7 = vld [vmem:[#allocation5 + $0x30] sm:$0xff]  }
  0x39   :  { %1349 = vmatprep.subr.bf16.mxu0 %v1516_v1  ;;  %v1522_v8 = vld [vmem:[#allocation5 + $0x38] sm:$0xff]   ;;  %v1524_v9 = vld [vmem:[#allocation2 + $0x8] sm:$0xff]   ;;  %v1525_v10 = vld [vmem:[#allocation2 + $0x10] sm:$0xff]  }
  0x3a   :  { %v1526_v11 = vld [vmem:[#allocation2 + $0x18] sm:$0xff]   ;;  %v1527_v12 = vld [vmem:[#allocation2 + $0x20] sm:$0xff]   ;;  %v1556_v14 = vld [vmem:[#allocation7 + $0x8] sm:$0xff]  }
  0x3b   :  { %v1555_v13 = vld [vmem:[#allocation7] sm:$0xff]   ;;  %v1557_v15 = vld [vmem:[#allocation7 + $0x10] sm:$0xff]   ;;  %v1528_v16 = vld [vmem:[#allocation2 + $0x28] sm:$0xff]  }
  0x3c   :  { %1350 = vmatpush3.bf16.msra.mxu0 %v1516_v1  ;;  %1427 = vmatprep.subr.bf16.mxu1 %v1555_v13  ;;  %v1529_v17 = vld [vmem:[#allocation2 + $0x30] sm:$0xff]   ;;  %v1558_v18 = vld [vmem:[#allocation7 + $0x18] sm:$0xff]   ;;  %v1559_v19 = vld [vmem:[#allocation7 + $0x20] sm:$0xff]  }
  0x3d   :  { %1351 = vmatprep.subr.bf16.mxu0 %v1517_v2  ;;  %1428 = vmatpush3.bf16.msra.mxu1 %v1555_v13  ;;  %v1530_v20 = vld [vmem:[#allocation2 + $0x38] sm:$0xff]   ;;  %v1531_v21 = vld [vmem:[#allocation2 + $0x40] sm:$0xff]   ;;  %v1560_v22 = vld [vmem:[#allocation7 + $0x28] sm:$0xff]  }
  0x3e   :  { %1429 = vmatprep.subr.bf16.mxu1 %v1556_v14  ;;  %v1532_v23 = vld [vmem:[#allocation2 + $0x48] sm:$0xff]   ;;  %v1533_v24 = vld [vmem:[#allocation2 + $0x50] sm:$0xff]   ;;  %v1534_v25 = vld [vmem:[#allocation2 + $0x58] sm:$0xff]  }
  0x3f   :  { %v1535_v26 = vld [vmem:[#allocation2 + $0x60] sm:$0xff]   ;;  %v1536_v27 = vld [vmem:[#allocation2 + $0x68] sm:$0xff]   ;;  %v1537_v28 = vld [vmem:[#allocation2 + $0x70] sm:$0xff]  }
  0x40   :  { %1352 = vmatpush3.bf16.msra.mxu0 %v1517_v2  ;;  %v1538_v29 = vld [vmem:[#allocation2 + $0x78] sm:$0xff]   ;;  %v1539_v30 = vld [vmem:[#allocation2 + $0x80] sm:$0xff]   ;;  %v1540_v31 = vld [vmem:[#allocation2 + $0x88] sm:$0xff]  }
  0x41   :  { %1353 = vmatprep.subr.bf16.mxu0 %v1518_v3  ;;  %1430 = vmatpush3.bf16.msra.mxu1 %v1556_v14  ;;  %v1541_v32 = vld [vmem:[#allocation2 + $0x90] sm:$0xff]   ;;  %v1542_v33 = vld [vmem:[#allocation2 + $0x98] sm:$0xff]   ;;  %v1543_v34 = vld [vmem:[#allocation2 + $0xa0] sm:$0xff]  }
  0x42   :  { %1431 = vmatprep.subr.bf16.mxu1 %v1557_v15  ;;  %v1544_v35 = vld [vmem:[#allocation2 + $0xa8] sm:$0xff]   ;;  %v1545_v36 = vld [vmem:[#allocation2 + $0xb0] sm:$0xff]   ;;  %v1546_v37 = vld [vmem:[#allocation2 + $0xb8] sm:$0xff]  }
  0x43   :  { %v1561_v38 = vld [vmem:[#allocation7 + $0x30] sm:$0xff]   ;;  %v1547_v39 = vld [vmem:[#allocation2 + $0xc0] sm:$0xff]   ;;  %v1562_v40 = vld [vmem:[#allocation7 + $0x38] sm:$0xff]  }
  0x44   :  { %1354 = vmatpush3.bf16.msra.mxu0 %v1518_v3  ;;  %v1548_v41 = vld [vmem:[#allocation2 + $0xc8] sm:$0xff]   ;;  %v1549_v42 = vld [vmem:[#allocation2 + $0xd0] sm:$0xff]   ;;  %v1550_v43 = vld [vmem:[#allocation2 + $0xd8] sm:$0xff]  }
  0x45   :  { %1355 = vmatprep.subr.bf16.mxu0 %v1519_v5  ;;  %1432 = vmatpush3.bf16.msra.mxu1 %v1557_v15  ;;  %v1551_v44 = vld [vmem:[#allocation2 + $0xe0] sm:$0xff]   ;;  %v1552_v45 = vld [vmem:[#allocation2 + $0xe8] sm:$0xff]   ;;  %v1553_v46 = vld [vmem:[#allocation2 + $0xf0] sm:$0xff]  }
  0x46   :  { %1433 = vmatprep.subr.bf16.mxu1 %v1558_v18  ;;  %v1554_v47 = vld [vmem:[#allocation2 + $0xf8] sm:$0xff]   ;;  %v1750_v48 = vld [vmem:[%s1899_s2] ss:$0 sm:$0xff] }
  0x48   :  { %1356 = vmatpush3.bf16.msra.mxu0 %v1519_v5 }
  0x49   :  { %1357 = vmatprep.subr.bf16.mxu0 %v1520_v6  ;;  %1434 = vmatpush3.bf16.msra.mxu1 %v1558_v18 }
  0x4a   :  { %1435 = vmatprep.subr.bf16.mxu1 %v1559_v19 }
  0x4c   :  { %1358 = vmatpush3.bf16.msra.mxu0 %v1520_v6 }
  0x4d   :  { %1359 = vmatprep.subr.bf16.mxu0 %v1521_v7  ;;  %1436 = vmatpush3.bf16.msra.mxu1 %v1559_v19 }
  0x4e   :  { %1437 = vmatprep.subr.bf16.mxu1 %v1560_v22 }
  0x50   :  { %1360 = vmatpush3.bf16.msra.mxu0 %v1521_v7 }
  0x51   :  { %1361 = vmatprep.subr.bf16.mxu0 %v1522_v8  ;;  %1438 = vmatpush3.bf16.msra.mxu1 %v1560_v22 }
  0x52   :  { %1439 = vmatprep.subr.bf16.mxu1 %v1561_v38 }
  0x54   :  { %1362 = vmatpush3.bf16.msra.mxu0 %v1522_v8 }
  0x55   :  { %1440 = vmatpush3.bf16.msra.mxu1 %v1561_v38 }
  0x56   :  { %1441 = vmatprep.subr.bf16.mxu1 %v1562_v40 }
  0x57   :  { %1364 = vmatmul.mubr.bf16.vlgmr.msra.gmra.mrb[0].mxu0 %v1524_v9 }
  0x58   :  { %1367 = vmatprep.mubr.bf16.mxu0 %v1525_v10 }
  0x59   :  { %1442 = vmatpush3.bf16.msra.mxu1 %v1562_v40 }
  0x5f   :  { %1368 = vmatmul.mubr.bf16.gmra.mrb[4].mxu0 %v1526_v11 }
  0x60   :  { %1371 = vmatprep.mubr.bf16.mxu0 %v1527_v12 }
  0x67   :  { %1372 = vmatmul.mubr.bf16.gmra.mrb[8].mxu0 %v1528_v16 }
  0x68   :  { %1375 = vmatprep.mubr.bf16.mxu0 %v1529_v17 }
  0x6f   :  { %1376 = vmatmul.mubr.bf16.gmra.mrb[12].mxu0 %v1530_v20 }
  0x70   :  { %1379 = vmatprep.mubr.bf16.mxu0 %v1531_v21 }
  0x77   :  { %1380 = vmatmul.mubr.bf16.gmra.mrb[16].mxu0 %v1532_v23 }
  0x78   :  { %1383 = vmatprep.mubr.bf16.mxu0 %v1533_v24 }
  0x7f   :  { %1384 = vmatmul.mubr.bf16.gmra.mrb[20].mxu0 %v1534_v25 }
  0x80   :  { %1387 = vmatprep.mubr.bf16.mxu0 %v1535_v26 }
  0x87   :  { %1388 = vmatmul.mubr.bf16.gmra.mrb[24].mxu0 %v1536_v27 }
  0x88   :  { %1391 = vmatprep.mubr.bf16.mxu0 %v1537_v28 }
  0x8f   :  { %1392 = vmatmul.mubr.bf16.gmra.mrb[28].mxu0 %v1538_v29 }
  0x90   :  { %1395 = vmatprep.mubr.bf16.mxu0 %v1539_v30 }
  0x97   :  { %1396 = vmatmul.mubr.bf16.gmra.mrb[32].mxu0 %v1540_v31 }
  0x98   :  { %1399 = vmatprep.mubr.bf16.mxu0 %v1541_v32 }
  0x9f   :  { %1400 = vmatmul.mubr.bf16.gmra.mrb[36].mxu0 %v1542_v33 }
  0xa0   :  { %1403 = vmatprep.mubr.bf16.mxu0 %v1543_v34 }
  0xa7   :  { %1404 = vmatmul.mubr.bf16.gmra.mrb[40].mxu0 %v1544_v35 }
  0xa8   :  { %1407 = vmatprep.mubr.bf16.mxu0 %v1545_v36 }
  0xaf   :  { %1408 = vmatmul.mubr.bf16.gmra.mrb[44].mxu0 %v1546_v37 }
  0xb0   :  { %1411 = vmatprep.mubr.bf16.mxu0 %v1547_v39 }
  0xb7   :  { %1412 = vmatmul.mubr.bf16.gmra.mrb[48].mxu0 %v1548_v41 }
  0xb8   :  { %1415 = vmatprep.mubr.bf16.mxu0 %v1549_v42 }
  0xbf   :  { %1416 = vmatmul.mubr.bf16.gmra.mrb[52].mxu0 %v1550_v43 }
  0xc0   :  { %1419 = vmatprep.mubr.bf16.mxu0 %v1551_v44 }
  0xc7   :  { %1420 = vmatmul.mubr.bf16.gmra.mrb[56].mxu0 %v1552_v45 }
  0xc8   :  { %1423 = vmatprep.mubr.bf16.mxu0 %v1553_v46 }
  0xcf   :  { %1424 = vmatmul.mubr.bf16.gmra.mrb[60].mxu0 %v1554_v47 }
 0x12a   :  { %v1365_v49 = vpop.f32.mrb[0].mxu0 }
 0x12b   :  { %v433_v50 = vadd.f32 %v1365_v49, %v1750_v48  ;;  %v424_v51 = vpop.f32.mrb[1].mxu0 }
 0x12c   :  { %v425_v52 = vadd.f32 %v1750_v48, %v424_v51  ;;  %v1366_v53 = vpop.f32.mrb[2].mxu0 }
 0x12d   :  { %v436_v54 = vadd.f32 %v1366_v53, %v1750_v48  ;;  %v427_v55 = vpop.f32.mrb[3].mxu0  ;;  %v681_v57 = vmax.f32 %v433_v50, 0.0 }
 0x12e   :  { %v428_v56 = vadd.f32 %v1750_v48, %v427_v55  ;;  %v679_v59 = vmax.f32 %v425_v52, 0.0 }
 0x12f   :  { %v682_v58 = vmax.f32 %v436_v54, 0.0 }
 0x130   :  { %v680_v60 = vmax.f32 %v428_v56, 0.0 }
 0x131   :  { %v744_v61 = vpack.c.bf16 %v682_v58, %v681_v57 }
 0x132   :  { %v1369_v62 = vpop.f32.mrb[4].mxu0  ;;  %v743_v63 = vpack.c.bf16 %v680_v60, %v679_v59 }
 0x133   :  { %v449_v0 = vadd.f32 %v1369_v62, %v1750_v48  ;;  %v440_v1 = vpop.f32.mrb[5].mxu0 }
 0x134   :  { %v441_v2 = vadd.f32 %v1750_v48, %v440_v1  ;;  %v1370_v3 = vpop.f32.mrb[6].mxu0  ;;  %1443 = vmatprep.mubr.bf16.mxu1 %v743_v63 }
 0x135   :  { %v452_v4 = vadd.f32 %v1370_v3, %v1750_v48  ;;  %v443_v5 = vpop.f32.mrb[7].mxu0  ;;  %1444 = vmatmul.mubr.bf16.vlgmr.msra.gmra.mrb[0].mxu1 %v744_v61  ;;  %v685_v7 = vmax.f32 %v449_v0, 0.0 }
 0x136   :  { %v444_v6 = vadd.f32 %v1750_v48, %v443_v5  ;;  %v683_v9 = vmax.f32 %v441_v2, 0.0 }
 0x137   :  { %v686_v8 = vmax.f32 %v452_v4, 0.0 }
 0x138   :  { %v684_v10 = vmax.f32 %v444_v6, 0.0 }
 0x139   :  { %v746_v11 = vpack.c.bf16 %v686_v8, %v685_v7 }
 0x13a   :  { %v745_v12 = vpack.c.bf16 %v684_v10, %v683_v9  ;;  %v1373_v13 = vpop.f32.mrb[8].mxu0 }
 0x13b   :  { %v465_v14 = vadd.f32 %v1373_v13, %v1750_v48  ;;  %v456_v15 = vpop.f32.mrb[9].mxu0 }
 0x13c   :  { %v457_v16 = vadd.f32 %v1750_v48, %v456_v15  ;;  %v1374_v17 = vpop.f32.mrb[10].mxu0  ;;  %1447 = vmatprep.mubr.bf16.mxu1 %v745_v12 }
 0x13d   :  { %v468_v18 = vadd.f32 %v1374_v17, %v1750_v48  ;;  %v459_v19 = vpop.f32.mrb[11].mxu0  ;;  %1448 = vmatmul.mubr.bf16.gmra.mrb[4].mxu1 %v746_v11  ;;  %v689_v21 = vmax.f32 %v465_v14, 0.0 }
 0x13e   :  { %v460_v20 = vadd.f32 %v1750_v48, %v459_v19  ;;  %v687_v23 = vmax.f32 %v457_v16, 0.0 }
 0x13f   :  { %v690_v22 = vmax.f32 %v468_v18, 0.0 }
 0x140   :  { %v688_v24 = vmax.f32 %v460_v20, 0.0 }
 0x141   :  { %v748_v25 = vpack.c.bf16 %v690_v22, %v689_v21 }
 0x142   :  { %v747_v26 = vpack.c.bf16 %v688_v24, %v687_v23  ;;  %v1377_v27 = vpop.f32.mrb[12].mxu0 }
 0x143   :  { %v481_v28 = vadd.f32 %v1377_v27, %v1750_v48  ;;  %v472_v29 = vpop.f32.mrb[13].mxu0 }
 0x144   :  { %v473_v30 = vadd.f32 %v1750_v48, %v472_v29  ;;  %v1378_v31 = vpop.f32.mrb[14].mxu0  ;;  %1451 = vmatprep.mubr.bf16.mxu1 %v747_v26 }
 0x145   :  { %v484_v32 = vadd.f32 %v1378_v31, %v1750_v48  ;;  %v475_v33 = vpop.f32.mrb[15].mxu0  ;;  %1452 = vmatmul.mubr.bf16.gmra.mrb[8].mxu1 %v748_v25  ;;  %v693_v35 = vmax.f32 %v481_v28, 0.0 }
 0x146   :  { %v476_v34 = vadd.f32 %v1750_v48, %v475_v33  ;;  %v691_v37 = vmax.f32 %v473_v30, 0.0 }
 0x147   :  { %v694_v36 = vmax.f32 %v484_v32, 0.0 }
 0x148   :  { %v692_v38 = vmax.f32 %v476_v34, 0.0 }
 0x149   :  { %v750_v39 = vpack.c.bf16 %v694_v36, %v693_v35 }
 0x14a   :  { %v749_v40 = vpack.c.bf16 %v692_v38, %v691_v37  ;;  %v1381_v41 = vpop.f32.mrb[16].mxu0 }
 0x14b   :  { %v497_v42 = vadd.f32 %v1381_v41, %v1750_v48  ;;  %v488_v43 = vpop.f32.mrb[17].mxu0 }
 0x14c   :  { %v489_v44 = vadd.f32 %v1750_v48, %v488_v43  ;;  %v1382_v45 = vpop.f32.mrb[18].mxu0  ;;  %1455 = vmatprep.mubr.bf16.mxu1 %v749_v40 }
 0x14d   :  { %v500_v46 = vadd.f32 %v1382_v45, %v1750_v48  ;;  %v491_v47 = vpop.f32.mrb[19].mxu0  ;;  %1456 = vmatmul.mubr.bf16.gmra.mrb[12].mxu1 %v750_v39  ;;  %v697_v50 = vmax.f32 %v497_v42, 0.0 }
 0x14e   :  { %v492_v49 = vadd.f32 %v1750_v48, %v491_v47  ;;  %v695_v52 = vmax.f32 %v489_v44, 0.0 }
 0x14f   :  { %v698_v51 = vmax.f32 %v500_v46, 0.0 }
 0x150   :  { %v696_v53 = vmax.f32 %v492_v49, 0.0 }
 0x151   :  { %v752_v54 = vpack.c.bf16 %v698_v51, %v697_v50 }
 0x152   :  { %v751_v55 = vpack.c.bf16 %v696_v53, %v695_v52  ;;  %v1385_v56 = vpop.f32.mrb[20].mxu0 }
 0x153   :  { %v513_v57 = vadd.f32 %v1385_v56, %v1750_v48  ;;  %v504_v58 = vpop.f32.mrb[21].mxu0 }
 0x154   :  { %v505_v59 = vadd.f32 %v1750_v48, %v504_v58  ;;  %v1386_v60 = vpop.f32.mrb[22].mxu0  ;;  %1459 = vmatprep.mubr.bf16.mxu1 %v751_v55 }
 0x155   :  { %v516_v61 = vadd.f32 %v1386_v60, %v1750_v48  ;;  %v507_v62 = vpop.f32.mrb[23].mxu0  ;;  %1460 = vmatmul.mubr.bf16.gmra.mrb[16].mxu1 %v752_v54  ;;  %v701_v0 = vmax.f32 %v513_v57, 0.0 }
 0x156   :  { %v508_v63 = vadd.f32 %v1750_v48, %v507_v62  ;;  %v699_v2 = vmax.f32 %v505_v59, 0.0 }
 0x157   :  { %v702_v1 = vmax.f32 %v516_v61, 0.0 }
 0x158   :  { %v700_v3 = vmax.f32 %v508_v63, 0.0 }
 0x159   :  { %v754_v4 = vpack.c.bf16 %v702_v1, %v701_v0 }
 0x15a   :  { %v753_v5 = vpack.c.bf16 %v700_v3, %v699_v2  ;;  %v1389_v6 = vpop.f32.mrb[24].mxu0 }
 0x15b   :  { %v529_v7 = vadd.f32 %v1389_v6, %v1750_v48  ;;  %v520_v8 = vpop.f32.mrb[25].mxu0 }
 0x15c   :  { %v521_v9 = vadd.f32 %v1750_v48, %v520_v8  ;;  %v1390_v10 = vpop.f32.mrb[26].mxu0  ;;  %1463 = vmatprep.mubr.bf16.mxu1 %v753_v5 }
 0x15d   :  { %v532_v11 = vadd.f32 %v1390_v10, %v1750_v48  ;;  %v523_v12 = vpop.f32.mrb[27].mxu0  ;;  %1464 = vmatmul.mubr.bf16.gmra.mrb[20].mxu1 %v754_v4  ;;  %v705_v14 = vmax.f32 %v529_v7, 0.0 }
 0x15e   :  { %v524_v13 = vadd.f32 %v1750_v48, %v523_v12  ;;  %v703_v16 = vmax.f32 %v521_v9, 0.0 }
 0x15f   :  { %v706_v15 = vmax.f32 %v532_v11, 0.0 }
 0x160   :  { %v704_v17 = vmax.f32 %v524_v13, 0.0 }
 0x161   :  { %v756_v18 = vpack.c.bf16 %v706_v15, %v705_v14 }
 0x162   :  { %v755_v19 = vpack.c.bf16 %v704_v17, %v703_v16  ;;  %v1393_v20 = vpop.f32.mrb[28].mxu0 }
 0x163   :  { %v545_v21 = vadd.f32 %v1393_v20, %v1750_v48  ;;  %v536_v22 = vpop.f32.mrb[29].mxu0 }
 0x164   :  { %v537_v23 = vadd.f32 %v1750_v48, %v536_v22  ;;  %v1394_v24 = vpop.f32.mrb[30].mxu0  ;;  %1467 = vmatprep.mubr.bf16.mxu1 %v755_v19 }
 0x165   :  { %v548_v25 = vadd.f32 %v1394_v24, %v1750_v48  ;;  %v539_v26 = vpop.f32.mrb[31].mxu0  ;;  %1468 = vmatmul.mubr.bf16.gmra.mrb[24].mxu1 %v756_v18  ;;  %v709_v28 = vmax.f32 %v545_v21, 0.0 }
 0x166   :  { %v540_v27 = vadd.f32 %v1750_v48, %v539_v26  ;;  %v707_v30 = vmax.f32 %v537_v23, 0.0 }
 0x167   :  { %v710_v29 = vmax.f32 %v548_v25, 0.0 }
 0x168   :  { %v708_v31 = vmax.f32 %v540_v27, 0.0 }
 0x169   :  { %v758_v32 = vpack.c.bf16 %v710_v29, %v709_v28 }
 0x16a   :  { %v757_v33 = vpack.c.bf16 %v708_v31, %v707_v30  ;;  %v1397_v34 = vpop.f32.mrb[32].mxu0 }
 0x16b   :  { %v561_v35 = vadd.f32 %v1397_v34, %v1750_v48  ;;  %v552_v36 = vpop.f32.mrb[33].mxu0 }
 0x16c   :  { %v553_v37 = vadd.f32 %v1750_v48, %v552_v36  ;;  %v1398_v38 = vpop.f32.mrb[34].mxu0  ;;  %1471 = vmatprep.mubr.bf16.mxu1 %v757_v33 }
 0x16d   :  { %v564_v39 = vadd.f32 %v1398_v38, %v1750_v48  ;;  %v555_v40 = vpop.f32.mrb[35].mxu0  ;;  %1472 = vmatmul.mubr.bf16.gmra.mrb[28].mxu1 %v758_v32  ;;  %v713_v42 = vmax.f32 %v561_v35, 0.0 }
 0x16e   :  { %v556_v41 = vadd.f32 %v1750_v48, %v555_v40  ;;  %v711_v44 = vmax.f32 %v553_v37, 0.0 }
 0x16f   :  { %v714_v43 = vmax.f32 %v564_v39, 0.0 }
 0x170   :  { %v712_v45 = vmax.f32 %v556_v41, 0.0 }
 0x171   :  { %v760_v46 = vpack.c.bf16 %v714_v43, %v713_v42 }
 0x172   :  { %v759_v47 = vpack.c.bf16 %v712_v45, %v711_v44  ;;  %v1401_v49 = vpop.f32.mrb[36].mxu0 }
 0x173   :  { %v577_v50 = vadd.f32 %v1401_v49, %v1750_v48  ;;  %v568_v51 = vpop.f32.mrb[37].mxu0 }
 0x174   :  { %v569_v52 = vadd.f32 %v1750_v48, %v568_v51  ;;  %v1402_v53 = vpop.f32.mrb[38].mxu0  ;;  %1475 = vmatprep.mubr.bf16.mxu1 %v759_v47 }
 0x175   :  { %v580_v54 = vadd.f32 %v1402_v53, %v1750_v48  ;;  %v571_v55 = vpop.f32.mrb[39].mxu0  ;;  %1476 = vmatmul.mubr.bf16.gmra.mrb[32].mxu1 %v760_v46  ;;  %v717_v57 = vmax.f32 %v577_v50, 0.0 }
 0x176   :  { %v572_v56 = vadd.f32 %v1750_v48, %v571_v55  ;;  %v715_v59 = vmax.f32 %v569_v52, 0.0 }
 0x177   :  { %v718_v58 = vmax.f32 %v580_v54, 0.0 }
 0x178   :  { %v716_v60 = vmax.f32 %v572_v56, 0.0 }
 0x179   :  { %v762_v61 = vpack.c.bf16 %v718_v58, %v717_v57 }
 0x17a   :  { %v761_v62 = vpack.c.bf16 %v716_v60, %v715_v59  ;;  %v1405_v63 = vpop.f32.mrb[40].mxu0 }
 0x17b   :  { %v593_v0 = vadd.f32 %v1405_v63, %v1750_v48  ;;  %v584_v1 = vpop.f32.mrb[41].mxu0 }
 0x17c   :  { %v585_v2 = vadd.f32 %v1750_v48, %v584_v1  ;;  %v1406_v3 = vpop.f32.mrb[42].mxu0  ;;  %1479 = vmatprep.mubr.bf16.mxu1 %v761_v62 }
 0x17d   :  { %v596_v4 = vadd.f32 %v1406_v3, %v1750_v48  ;;  %v587_v5 = vpop.f32.mrb[43].mxu0  ;;  %1480 = vmatmul.mubr.bf16.gmra.mrb[36].mxu1 %v762_v61  ;;  %v721_v7 = vmax.f32 %v593_v0, 0.0 }
 0x17e   :  { %v588_v6 = vadd.f32 %v1750_v48, %v587_v5  ;;  %v719_v9 = vmax.f32 %v585_v2, 0.0 }
 0x17f   :  { %v722_v8 = vmax.f32 %v596_v4, 0.0 }
 0x180   :  { %v720_v10 = vmax.f32 %v588_v6, 0.0 }
 0x181   :  { %v764_v11 = vpack.c.bf16 %v722_v8, %v721_v7 }
 0x182   :  { %v763_v12 = vpack.c.bf16 %v720_v10, %v719_v9  ;;  %v1409_v13 = vpop.f32.mrb[44].mxu0 }
 0x183   :  { %v609_v14 = vadd.f32 %v1409_v13, %v1750_v48  ;;  %v600_v15 = vpop.f32.mrb[45].mxu0 }
 0x184   :  { %v601_v16 = vadd.f32 %v1750_v48, %v600_v15  ;;  %v1410_v17 = vpop.f32.mrb[46].mxu0  ;;  %1483 = vmatprep.mubr.bf16.mxu1 %v763_v12 }
 0x185   :  { %v612_v18 = vadd.f32 %v1410_v17, %v1750_v48  ;;  %v603_v19 = vpop.f32.mrb[47].mxu0  ;;  %1484 = vmatmul.mubr.bf16.gmra.mrb[40].mxu1 %v764_v11  ;;  %v725_v21 = vmax.f32 %v609_v14, 0.0 }
 0x186   :  { %v604_v20 = vadd.f32 %v1750_v48, %v603_v19  ;;  %v723_v23 = vmax.f32 %v601_v16, 0.0 }
 0x187   :  { %v726_v22 = vmax.f32 %v612_v18, 0.0 }
 0x188   :  { %v724_v24 = vmax.f32 %v604_v20, 0.0  ;;  %v1819_v20 = vld [vmem:[%s1901_s4] ss:$0 sm:$0xff]  ;;  %s1662_s4 = smov [#allocation8]  }
 0x189   :  { %v766_v25 = vpack.c.bf16 %v726_v22, %v725_v21  ;;  %s1204_s6 = sshll.u32 %s1662_s4, 4  ;;  %s1205_s6 = int_to_ptr.vmem [resolvable:$true] %s1204_s6 }
 0x18a   :  { %v765_v26 = vpack.c.bf16 %v724_v24, %v723_v23  ;;  %v1413_v27 = vpop.f32.mrb[48].mxu0  ;;  %s1629_s7 = scalar_lea.vmem %s1205_s6, 8192  ;;  %p1634_p11 = scmp.lt.s32.totalorder %s1205_s6, %s1205_s6 }
 0x18b   :  { %v625_v28 = vadd.f32 %v1413_v27, %v1750_v48  ;;  %v616_v29 = vpop.f32.mrb[49].mxu0  ;;  %p1630_p10 = scmp.ne.s32.totalorder %s1205_s6, %s1629_s7  ;;  %p1635_p12 = scmp.lt.s32.totalorder %s1629_s7, %s1629_s7 }
 0x18c   :  { %v617_v30 = vadd.f32 %v1750_v48, %v616_v29  ;;  %v1414_v31 = vpop.f32.mrb[50].mxu0  ;;  %1487 = vmatprep.mubr.bf16.mxu1 %v765_v26 }
 0x18d   :  { %v628_v32 = vadd.f32 %v1414_v31, %v1750_v48  ;;  %v619_v33 = vpop.f32.mrb[51].mxu0  ;;  %1488 = vmatmul.mubr.bf16.gmra.mrb[44].mxu1 %v766_v25  ;;  %v729_v35 = vmax.f32 %v625_v28, 0.0  ;;  %p1636_p13 = por %p1635_p12, %p1634_p11 }
 0x18e   :  { %v620_v34 = vadd.f32 %v1750_v48, %v619_v33  ;;  %v727_v37 = vmax.f32 %v617_v30, 0.0 }
 0x18f   :  { %v730_v36 = vmax.f32 %v628_v32, 0.0  ;;  %p1637_p0 = pnand %p1636_p13, %p1630_p10 }
 0x190   :  { %v728_v38 = vmax.f32 %v620_v34, 0.0 }
 0x191   :  { %v768_v39 = vpack.c.bf16 %v730_v36, %v729_v35 }
 0x192   :  { %v767_v40 = vpack.c.bf16 %v728_v38, %v727_v37  ;;  %v1417_v41 = vpop.f32.mrb[52].mxu0 }
 0x193   :  { %v641_v42 = vadd.f32 %v1417_v41, %v1750_v48  ;;  %v632_v43 = vpop.f32.mrb[53].mxu0 }
 0x194   :  { %v633_v44 = vadd.f32 %v1750_v48, %v632_v43  ;;  %v1418_v45 = vpop.f32.mrb[54].mxu0  ;;  %1491 = vmatprep.mubr.bf16.mxu1 %v767_v40 }
 0x195   :  { %v644_v46 = vadd.f32 %v1418_v45, %v1750_v48  ;;  %v635_v47 = vpop.f32.mrb[55].mxu0  ;;  %1492 = vmatmul.mubr.bf16.gmra.mrb[48].mxu1 %v768_v39  ;;  %v733_v50 = vmax.f32 %v641_v42, 0.0 }
 0x196   :  { %v636_v49 = vadd.f32 %v1750_v48, %v635_v47  ;;  %v731_v52 = vmax.f32 %v633_v44, 0.0 }
 0x197   :  { %v734_v51 = vmax.f32 %v644_v46, 0.0 }
 0x198   :  { %v732_v53 = vmax.f32 %v636_v49, 0.0 }
 0x199   :  { %v770_v54 = vpack.c.bf16 %v734_v51, %v733_v50 }
 0x19a   :  { %v769_v55 = vpack.c.bf16 %v732_v53, %v731_v52  ;;  %v1421_v56 = vpop.f32.mrb[56].mxu0 }
 0x19b   :  { %v657_v57 = vadd.f32 %v1421_v56, %v1750_v48  ;;  %v648_v58 = vpop.f32.mrb[57].mxu0 }
 0x19c   :  { %v649_v59 = vadd.f32 %v1750_v48, %v648_v58  ;;  %v1422_v60 = vpop.f32.mrb[58].mxu0  ;;  %1495 = vmatprep.mubr.bf16.mxu1 %v769_v55 }
 0x19d   :  { %v660_v61 = vadd.f32 %v1422_v60, %v1750_v48  ;;  %v651_v62 = vpop.f32.mrb[59].mxu0  ;;  %1496 = vmatmul.mubr.bf16.gmra.mrb[52].mxu1 %v770_v54  ;;  %v737_v0 = vmax.f32 %v657_v57, 0.0 }
 0x19e   :  { %v652_v63 = vadd.f32 %v1750_v48, %v651_v62  ;;  %v735_v2 = vmax.f32 %v649_v59, 0.0 }
 0x19f   :  { %v738_v1 = vmax.f32 %v660_v61, 0.0 }
 0x1a0   :  { %v736_v3 = vmax.f32 %v652_v63, 0.0 }
 0x1a1   :  { %v772_v4 = vpack.c.bf16 %v738_v1, %v737_v0 }
 0x1a2   :  { %v771_v5 = vpack.c.bf16 %v736_v3, %v735_v2  ;;  %v1425_v6 = vpop.f32.mrb[60].mxu0 }
 0x1a3   :  { %v673_v7 = vadd.f32 %v1425_v6, %v1750_v48  ;;  %v664_v8 = vpop.f32.mrb[61].mxu0 }
 0x1a4   :  { %v665_v9 = vadd.f32 %v1750_v48, %v664_v8  ;;  %v1426_v10 = vpop.f32.mrb[62].mxu0  ;;  %1499 = vmatprep.mubr.bf16.mxu1 %v771_v5 }
 0x1a5   :  { %v676_v11 = vadd.f32 %v1426_v10, %v1750_v48  ;;  %v667_v12 = vpop.f32.mrb[63].mxu0  ;;  %1500 = vmatmul.mubr.bf16.gmra.mrb[56].mxu1 %v772_v4  ;;  %v741_v14 = vmax.f32 %v673_v7, 0.0 }
 0x1a6   :  { %v668_v13 = vadd.f32 %v1750_v48, %v667_v12  ;;  %v739_v16 = vmax.f32 %v665_v9, 0.0 }
 0x1a7   :  { %v742_v15 = vmax.f32 %v676_v11, 0.0 }
 0x1a8   :  { %v740_v17 = vmax.f32 %v668_v13, 0.0 }
 0x1a9   :  { %v774_v18 = vpack.c.bf16 %v742_v15, %v741_v14 }
 0x1aa   :  { %v773_v19 = vpack.c.bf16 %v740_v17, %v739_v16 }
 0x1ac   :  { %1503 = vmatprep.mubr.bf16.mxu1 %v773_v19 }
 0x1ad   :  { %1504 = vmatmul.mubr.bf16.gmra.mrb[60].mxu1 %v774_v18 }
 0x208   :  { %v1445_v21 = vpop.f32.mrb[0].mxu1 }
 0x209   :  { %v889_v22 = vadd.f32 %v1445_v21, %v1819_v20  ;;  %v880_v23 = vpop.f32.mrb[1].mxu1 }
 0x20a   :  { %v881_v24 = vadd.f32 %v1819_v20, %v880_v23  ;;  %v1446_v48 = vpop.f32.mrb[2].mxu1 }
 0x20b   :  { %1137 = vst [vmem:[#allocation8 + $0x10] sm:$0xff] %v889_v22  ;;  %v892_v25 = vadd.f32 %v1446_v48, %v1819_v20  ;;  %v883_v26 = vpop.f32.mrb[3].mxu1 }
 0x20c   :  { %1135 = vst [vmem:[#allocation8] sm:$0xff] %v881_v24  ;;  %v884_v27 = vadd.f32 %v1819_v20, %v883_v26 }
 0x20d   :  { %1138 = vst [vmem:[#allocation8 + $0x18] sm:$0xff] %v892_v25 }
 0x20e   :  { %1136 = vst [vmem:[#allocation8 + $0x8] sm:$0xff] %v884_v27 }
 0x210   :  { %v1449_v28 = vpop.f32.mrb[4].mxu1 }
 0x211   :  { %v905_v29 = vadd.f32 %v1449_v28, %v1819_v20  ;;  %v896_v30 = vpop.f32.mrb[5].mxu1 }
 0x212   :  { %v897_v31 = vadd.f32 %v1819_v20, %v896_v30  ;;  %v1450_v32 = vpop.f32.mrb[6].mxu1 }
 0x213   :  { %1141 = vst [vmem:[#allocation8 + $0x30] sm:$0xff] %v905_v29  ;;  %v908_v33 = vadd.f32 %v1450_v32, %v1819_v20  ;;  %v899_v34 = vpop.f32.mrb[7].mxu1 }
 0x214   :  { %1139 = vst [vmem:[#allocation8 + $0x20] sm:$0xff] %v897_v31  ;;  %v900_v35 = vadd.f32 %v1819_v20, %v899_v34 }
 0x215   :  { %1142 = vst [vmem:[#allocation8 + $0x38] sm:$0xff] %v908_v33 }
 0x216   :  { %1140 = vst [vmem:[#allocation8 + $0x28] sm:$0xff] %v900_v35 }
 0x218   :  { %v1453_v36 = vpop.f32.mrb[8].mxu1 }
 0x219   :  { %v921_v37 = vadd.f32 %v1453_v36, %v1819_v20  ;;  %v912_v38 = vpop.f32.mrb[9].mxu1 }
 0x21a   :  { %v913_v39 = vadd.f32 %v1819_v20, %v912_v38  ;;  %v1454_v40 = vpop.f32.mrb[10].mxu1 }
 0x21b   :  { %1145 = vst [vmem:[#allocation8 + $0x50] sm:$0xff] %v921_v37  ;;  %v924_v41 = vadd.f32 %v1454_v40, %v1819_v20  ;;  %v915_v42 = vpop.f32.mrb[11].mxu1 }
 0x21c   :  { %1143 = vst [vmem:[#allocation8 + $0x40] sm:$0xff] %v913_v39  ;;  %v916_v43 = vadd.f32 %v1819_v20, %v915_v42 }
 0x21d   :  { %1146 = vst [vmem:[#allocation8 + $0x58] sm:$0xff] %v924_v41 }
 0x21e   :  { %1144 = vst [vmem:[#allocation8 + $0x48] sm:$0xff] %v916_v43 }
 0x220   :  { %v1457_v44 = vpop.f32.mrb[12].mxu1 }
 0x221   :  { %v937_v45 = vadd.f32 %v1457_v44, %v1819_v20  ;;  %v928_v46 = vpop.f32.mrb[13].mxu1 }
 0x222   :  { %v929_v47 = vadd.f32 %v1819_v20, %v928_v46  ;;  %v1458_v49 = vpop.f32.mrb[14].mxu1 }
 0x223   :  { %1149 = vst [vmem:[#allocation8 + $0x70] sm:$0xff] %v937_v45  ;;  %v940_v50 = vadd.f32 %v1458_v49, %v1819_v20  ;;  %v931_v51 = vpop.f32.mrb[15].mxu1 }
 0x224   :  { %1147 = vst [vmem:[#allocation8 + $0x60] sm:$0xff] %v929_v47  ;;  %v932_v52 = vadd.f32 %v1819_v20, %v931_v51 }
 0x225   :  { %1150 = vst [vmem:[#allocation8 + $0x78] sm:$0xff] %v940_v50 }
 0x226   :  { %1148 = vst [vmem:[#allocation8 + $0x68] sm:$0xff] %v932_v52 }
 0x228   :  { %v1461_v53 = vpop.f32.mrb[16].mxu1 }
 0x229   :  { %v953_v54 = vadd.f32 %v1461_v53, %v1819_v20  ;;  %v944_v55 = vpop.f32.mrb[17].mxu1 }
 0x22a   :  { %v945_v56 = vadd.f32 %v1819_v20, %v944_v55  ;;  %v1462_v57 = vpop.f32.mrb[18].mxu1 }
 0x22b   :  { %1153 = vst [vmem:[#allocation8 + $0x90] sm:$0xff] %v953_v54  ;;  %v956_v58 = vadd.f32 %v1462_v57, %v1819_v20  ;;  %v947_v59 = vpop.f32.mrb[19].mxu1 }
 0x22c   :  { %1151 = vst [vmem:[#allocation8 + $0x80] sm:$0xff] %v945_v56  ;;  %v948_v60 = vadd.f32 %v1819_v20, %v947_v59 }
 0x22d   :  { %1154 = vst [vmem:[#allocation8 + $0x98] sm:$0xff] %v956_v58 }
 0x22e   :  { %1152 = vst [vmem:[#allocation8 + $0x88] sm:$0xff] %v948_v60 }
 0x230   :  { %v1465_v61 = vpop.f32.mrb[20].mxu1 }
 0x231   :  { %v969_v62 = vadd.f32 %v1465_v61, %v1819_v20  ;;  %v960_v63 = vpop.f32.mrb[21].mxu1 }
 0x232   :  { %v961_v0 = vadd.f32 %v1819_v20, %v960_v63  ;;  %v1466_v1 = vpop.f32.mrb[22].mxu1 }
 0x233   :  { %1157 = vst [vmem:[#allocation8 + $0xb0] sm:$0xff] %v969_v62  ;;  %v972_v2 = vadd.f32 %v1466_v1, %v1819_v20  ;;  %v963_v3 = vpop.f32.mrb[23].mxu1 }
 0x234   :  { %1155 = vst [vmem:[#allocation8 + $0xa0] sm:$0xff] %v961_v0  ;;  %v964_v4 = vadd.f32 %v1819_v20, %v963_v3 }
 0x235   :  { %1158 = vst [vmem:[#allocation8 + $0xb8] sm:$0xff] %v972_v2 }
 0x236   :  { %1156 = vst [vmem:[#allocation8 + $0xa8] sm:$0xff] %v964_v4 }
 0x238   :  { %v1469_v5 = vpop.f32.mrb[24].mxu1 }
 0x239   :  { %v985_v6 = vadd.f32 %v1469_v5, %v1819_v20  ;;  %v976_v7 = vpop.f32.mrb[25].mxu1 }
 0x23a   :  { %v977_v8 = vadd.f32 %v1819_v20, %v976_v7  ;;  %v1470_v9 = vpop.f32.mrb[26].mxu1 }
 0x23b   :  { %1161 = vst [vmem:[#allocation8 + $0xd0] sm:$0xff] %v985_v6  ;;  %v988_v10 = vadd.f32 %v1470_v9, %v1819_v20  ;;  %v979_v11 = vpop.f32.mrb[27].mxu1 }
 0x23c   :  { %1159 = vst [vmem:[#allocation8 + $0xc0] sm:$0xff] %v977_v8  ;;  %v980_v12 = vadd.f32 %v1819_v20, %v979_v11 }
 0x23d   :  { %1162 = vst [vmem:[#allocation8 + $0xd8] sm:$0xff] %v988_v10 }
 0x23e   :  { %1160 = vst [vmem:[#allocation8 + $0xc8] sm:$0xff] %v980_v12 }
 0x240   :  { %v1473_v13 = vpop.f32.mrb[28].mxu1 }
 0x241   :  { %v1001_v14 = vadd.f32 %v1473_v13, %v1819_v20  ;;  %v992_v15 = vpop.f32.mrb[29].mxu1 }
 0x242   :  { %v993_v16 = vadd.f32 %v1819_v20, %v992_v15  ;;  %v1474_v17 = vpop.f32.mrb[30].mxu1 }
 0x243   :  { %1165 = vst [vmem:[#allocation8 + $0xf0] sm:$0xff] %v1001_v14  ;;  %v1004_v18 = vadd.f32 %v1474_v17, %v1819_v20  ;;  %v995_v19 = vpop.f32.mrb[31].mxu1 }
 0x244   :  { %1163 = vst [vmem:[#allocation8 + $0xe0] sm:$0xff] %v993_v16  ;;  %v996_v21 = vadd.f32 %v1819_v20, %v995_v19 }
 0x245   :  { %1166 = vst [vmem:[#allocation8 + $0xf8] sm:$0xff] %v1004_v18 }
 0x246   :  { %1164 = vst [vmem:[#allocation8 + $0xe8] sm:$0xff] %v996_v21 }
 0x248   :  { %v1477_v22 = vpop.f32.mrb[32].mxu1 }
 0x249   :  { %v1017_v23 = vadd.f32 %v1477_v22, %v1819_v20  ;;  %v1008_v24 = vpop.f32.mrb[33].mxu1 }
 0x24a   :  { %v1009_v48 = vadd.f32 %v1819_v20, %v1008_v24  ;;  %v1478_v25 = vpop.f32.mrb[34].mxu1 }
 0x24b   :  { %1169 = vst [vmem:[#allocation8 + $0x110] sm:$0xff] %v1017_v23  ;;  %v1020_v26 = vadd.f32 %v1478_v25, %v1819_v20  ;;  %v1011_v27 = vpop.f32.mrb[35].mxu1 }
 0x24c   :  { %1167 = vst [vmem:[#allocation8 + $0x100] sm:$0xff] %v1009_v48  ;;  %v1012_v28 = vadd.f32 %v1819_v20, %v1011_v27 }
 0x24d   :  { %1170 = vst [vmem:[#allocation8 + $0x118] sm:$0xff] %v1020_v26 }
 0x24e   :  { %1168 = vst [vmem:[#allocation8 + $0x108] sm:$0xff] %v1012_v28 }
 0x250   :  { %v1481_v29 = vpop.f32.mrb[36].mxu1 }
 0x251   :  { %v1033_v30 = vadd.f32 %v1481_v29, %v1819_v20  ;;  %v1024_v31 = vpop.f32.mrb[37].mxu1 }
 0x252   :  { %v1025_v32 = vadd.f32 %v1819_v20, %v1024_v31  ;;  %v1482_v33 = vpop.f32.mrb[38].mxu1 }
 0x253   :  { %1173 = vst [vmem:[#allocation8 + $0x130] sm:$0xff] %v1033_v30  ;;  %v1036_v34 = vadd.f32 %v1482_v33, %v1819_v20  ;;  %v1027_v35 = vpop.f32.mrb[39].mxu1 }
 0x254   :  { %1171 = vst [vmem:[#allocation8 + $0x120] sm:$0xff] %v1025_v32  ;;  %v1028_v36 = vadd.f32 %v1819_v20, %v1027_v35 }
 0x255   :  { %1174 = vst [vmem:[#allocation8 + $0x138] sm:$0xff] %v1036_v34 }
 0x256   :  { %1172 = vst [vmem:[#allocation8 + $0x128] sm:$0xff] %v1028_v36 }
 0x258   :  { %v1485_v37 = vpop.f32.mrb[40].mxu1 }
 0x259   :  { %v1049_v38 = vadd.f32 %v1485_v37, %v1819_v20  ;;  %v1040_v39 = vpop.f32.mrb[41].mxu1 }
 0x25a   :  { %v1041_v40 = vadd.f32 %v1819_v20, %v1040_v39  ;;  %v1486_v41 = vpop.f32.mrb[42].mxu1 }
 0x25b   :  { %1177 = vst [vmem:[#allocation8 + $0x150] sm:$0xff] %v1049_v38  ;;  %v1052_v42 = vadd.f32 %v1486_v41, %v1819_v20  ;;  %v1043_v43 = vpop.f32.mrb[43].mxu1 }
 0x25c   :  { %1175 = vst [vmem:[#allocation8 + $0x140] sm:$0xff] %v1041_v40  ;;  %v1044_v44 = vadd.f32 %v1819_v20, %v1043_v43 }
 0x25d   :  { %1178 = vst [vmem:[#allocation8 + $0x158] sm:$0xff] %v1052_v42 }
 0x25e   :  { %1176 = vst [vmem:[#allocation8 + $0x148] sm:$0xff] %v1044_v44 }
 0x260   :  { %v1489_v45 = vpop.f32.mrb[44].mxu1 }
 0x261   :  { %v1065_v46 = vadd.f32 %v1489_v45, %v1819_v20  ;;  %v1056_v47 = vpop.f32.mrb[45].mxu1 }
 0x262   :  { %v1057_v49 = vadd.f32 %v1819_v20, %v1056_v47  ;;  %v1490_v50 = vpop.f32.mrb[46].mxu1 }
 0x263   :  { %1181 = vst [vmem:[#allocation8 + $0x170] sm:$0xff] %v1065_v46  ;;  %v1068_v51 = vadd.f32 %v1490_v50, %v1819_v20  ;;  %v1059_v52 = vpop.f32.mrb[47].mxu1 }
 0x264   :  { %1179 = vst [vmem:[#allocation8 + $0x160] sm:$0xff] %v1057_v49  ;;  %v1060_v53 = vadd.f32 %v1819_v20, %v1059_v52 }
 0x265   :  { %1182 = vst [vmem:[#allocation8 + $0x178] sm:$0xff] %v1068_v51 }
 0x266   :  { %1180 = vst [vmem:[#allocation8 + $0x168] sm:$0xff] %v1060_v53 }
 0x268   :  { %v1493_v54 = vpop.f32.mrb[48].mxu1 }
 0x269   :  { %v1081_v55 = vadd.f32 %v1493_v54, %v1819_v20  ;;  %v1072_v56 = vpop.f32.mrb[49].mxu1 }
 0x26a   :  { %v1073_v57 = vadd.f32 %v1819_v20, %v1072_v56  ;;  %v1494_v58 = vpop.f32.mrb[50].mxu1 }
 0x26b   :  { %1185 = vst [vmem:[#allocation8 + $0x190] sm:$0xff] %v1081_v55  ;;  %v1084_v59 = vadd.f32 %v1494_v58, %v1819_v20  ;;  %v1075_v60 = vpop.f32.mrb[51].mxu1 }
 0x26c   :  { %1183 = vst [vmem:[#allocation8 + $0x180] sm:$0xff] %v1073_v57  ;;  %v1076_v61 = vadd.f32 %v1819_v20, %v1075_v60 }
 0x26d   :  { %1186 = vst [vmem:[#allocation8 + $0x198] sm:$0xff] %v1084_v59 }
 0x26e   :  { %1184 = vst [vmem:[#allocation8 + $0x188] sm:$0xff] %v1076_v61 }
 0x270   :  { %v1497_v62 = vpop.f32.mrb[52].mxu1 }
 0x271   :  { %v1097_v63 = vadd.f32 %v1497_v62, %v1819_v20  ;;  %v1088_v0 = vpop.f32.mrb[53].mxu1 }
 0x272   :  { %v1089_v1 = vadd.f32 %v1819_v20, %v1088_v0  ;;  %v1498_v2 = vpop.f32.mrb[54].mxu1 }
 0x273   :  { %1189 = vst [vmem:[#allocation8 + $0x1b0] sm:$0xff] %v1097_v63  ;;  %v1100_v3 = vadd.f32 %v1498_v2, %v1819_v20  ;;  %v1091_v4 = vpop.f32.mrb[55].mxu1 }
 0x274   :  { %1187 = vst [vmem:[#allocation8 + $0x1a0] sm:$0xff] %v1089_v1  ;;  %v1092_v5 = vadd.f32 %v1819_v20, %v1091_v4 }
 0x275   :  { %1190 = vst [vmem:[#allocation8 + $0x1b8] sm:$0xff] %v1100_v3 }
 0x276   :  { %1188 = vst [vmem:[#allocation8 + $0x1a8] sm:$0xff] %v1092_v5 }
 0x278   :  { %v1501_v6 = vpop.f32.mrb[56].mxu1 }
 0x279   :  { %v1113_v7 = vadd.f32 %v1501_v6, %v1819_v20  ;;  %v1104_v8 = vpop.f32.mrb[57].mxu1 }
 0x27a   :  { %v1105_v9 = vadd.f32 %v1819_v20, %v1104_v8  ;;  %v1502_v10 = vpop.f32.mrb[58].mxu1 }
 0x27b   :  { %1193 = vst [vmem:[#allocation8 + $0x1d0] sm:$0xff] %v1113_v7  ;;  %v1116_v11 = vadd.f32 %v1502_v10, %v1819_v20  ;;  %v1107_v12 = vpop.f32.mrb[59].mxu1 }
 0x27c   :  { %1191 = vst [vmem:[#allocation8 + $0x1c0] sm:$0xff] %v1105_v9  ;;  %v1108_v13 = vadd.f32 %v1819_v20, %v1107_v12 }
 0x27d   :  { %1194 = vst [vmem:[#allocation8 + $0x1d8] sm:$0xff] %v1116_v11 }
 0x27e   :  { %1192 = vst [vmem:[#allocation8 + $0x1c8] sm:$0xff] %v1108_v13 }
 0x280   :  { %v1505_v14 = vpop.f32.mrb[60].mxu1 }
 0x281   :  { %v1129_v15 = vadd.f32 %v1505_v14, %v1819_v20  ;;  %v1120_v16 = vpop.f32.mrb[61].mxu1 }
 0x282   :  { %v1121_v17 = vadd.f32 %v1819_v20, %v1120_v16  ;;  %v1506_v18 = vpop.f32.mrb[62].mxu1 }
 0x283   :  { %1197 = vst [vmem:[#allocation8 + $0x1f0] sm:$0xff] %v1129_v15  ;;  %v1132_v19 = vadd.f32 %v1506_v18, %v1819_v20  ;;  %v1123_v21 = vpop.f32.mrb[63].mxu1 }
 0x284   :  { %1195 = vst [vmem:[#allocation8 + $0x1e0] sm:$0xff] %v1121_v17  ;;  %v1124_v22 = vadd.f32 %v1819_v20, %v1123_v21 }
 0x285   :  { %1198 = vst [vmem:[#allocation8 + $0x1f8] sm:$0xff] %v1132_v19 }
 0x286   :  { %1196 = vst [vmem:[#allocation8 + $0x1e8] sm:$0xff] %v1124_v22 }
 0x287   :  { %1640 = shalt.err (!%p1637_p0)
}
 0x288   :  { %s1641_s10 = scalar_lea.hbm %s1902_s5, 8192 }
 0x289   :  { %p1642_p1 = scmp.ne.s32.totalorder %s1902_s5, %s1641_s10  ;;  %p1645_p2 = scmp.lt.u32.totalorder %s1641_s10, %s1902_s5 }
 0x28b   :  { %p1647_p3 = pnand %p1645_p2, %p1642_p1 }
 0x28d   :  { %1650 = shalt.err (!%p1647_p3)
}
 0x28e   :  { %s1663_s15 = smov 128   ;;  %s1664_s16 = smov 8  }
 0x28f   :  { %1210 = dma.vmem_to_hbm [thread:$0]  %s1205_s6, 8192, %s1902_s5, [#allocation4], %s1663_s15, %s1663_s15, %s1664_s16  }
 0x290   :  { %1655 = dma.done.wait [#allocation4], 8192  }
 0x291   :  { %1656 = vsyncadd [#allocation4], 4294959104 }
 0x292   :  { %1214 = vsyncpa [#allocation3], 1 }
 0x293   :  { %1215 = vsyncpa [#allocation6], 1 }
 0x294   :  { %1216 = vsyncpa [#allocation4], 1 }

</bundles_post_ra>
